<compile_context>
chip_gen: v7x
topology: tpu7x:2x2x1
jax: 0.10.0
libtpu: 0.0.40
codegen_flags: <defaults>
</compile_context>

<pallas_src>
import jax
import jax.numpy as jnp
from jax.experimental import pallas as pl
from jax.experimental.pallas import tpu as pltpu

# ---------------------------------------------------------------------------
# Config (mirrors the PyTorch module's `config` object / ctor args)
# ---------------------------------------------------------------------------
DIM_FEATURES = 4          # dim_features        (node feature channels)
DIM_TARGET = 6            # dim_target
NUM_RANDOM_FEATURES = 32  # config.num_random_features  (GRNF channels)
NUM_HIDDEN_FEATURES = 16  # config.num_hidden_features  (GRNF hidden width)
NUM_HIDDEN_NEURONS = 32   # config.num_hidden_neurons
NUM_DENSE_LAYERS = 2      # config.num_dense_layers
ORDER_2_PRC = 0.67

M2 = int(round(ORDER_2_PRC * NUM_RANDOM_FEATURES))   # number of order-2 features (21)
M1 = NUM_RANDOM_FEATURES - M2                        # number of order-1 features (11)
M_TOTAL = NUM_RANDOM_FEATURES                        # 32
H = NUM_HIDDEN_FEATURES
MH = M_TOTAL * H                                     # 512 = 4 lane tiles (lane-dense)

B_BLK = 8                                            # graphs per grid step
LANE = 128


# ---------------------------------------------------------------------------
# Bias packing layout: one lane-tile-aligned slab -> single prologue DMA
# ---------------------------------------------------------------------------
def _bias_layout(num_dense):
    off_b1 = 0
    off_b2 = ((MH + LANE - 1) // LANE) * LANE            # 512
    off_dense = [off_b2 + LANE * (1 + i) for i in range(num_dense)]
    total = off_b2 + LANE * (1 + num_dense)
    return off_b1, off_b2, off_dense, total


# ---------------------------------------------------------------------------
# Fused Pallas kernel (GRNF features + psi + dense head) for one graph block
# ---------------------------------------------------------------------------
def make_grnf_kernel(b_blk, n, num_dense, off_b1, off_b2, off_dense):
    def kernel(x_ref, a_ref, w1s_ref, w2seg_ref, bias_ref, *rest):
        dense_w = rest[:-1]
        o_ref = rest[-1]

        # ---- message passing: one aligned block-diagonal dot for all graphs ----
        xf = x_ref[...]                                                # (BN, F)
        axf = jnp.dot(a_ref[...], xf, preferred_element_type=jnp.float32)  # (BN, F)
        xin = jnp.concatenate([xf, axf], axis=1)                       # (BN, 2F)

        # ---- fused order-1/order-2 hidden map: single lane-dense matmul --------
        b1 = bias_ref[:, off_b1:off_b1 + MH]                           # (1, MH)
        z = jnp.maximum(
            jnp.dot(xin, w1s_ref[...], preferred_element_type=jnp.float32) + b1,
            0.0)                                                       # (BN, MH)

        # ---- readout matmul FIRST (MXU), then narrow node-sum (1 lane tile) ----
        zr = jnp.dot(z, w2seg_ref[...], preferred_element_type=jnp.float32)  # (BN, M)
        p = zr.reshape(b_blk, n, M_TOTAL).sum(axis=1)                  # (b_blk, M)
        psi = p + bias_ref[:, off_b2:off_b2 + M_TOTAL]

        # ---- dense head: x = Linear(relu(x)) per layer, all in vregs -----------
        h = psi
        for i in range(num_dense):
            w_ref = dense_w[i]
            od = w_ref.shape[1]
            h = jnp.dot(jnp.maximum(h, 0.0), w_ref[...],
                        preferred_element_type=jnp.float32) \
                + bias_ref[:, off_dense[i]:off_dense[i] + od]
        o_ref[...] = h                                                 # (b_blk, DIM_TARGET)

    return kernel


# ---------------------------------------------------------------------------
# Wrapper: gridded pallas_call over graph blocks
# ---------------------------------------------------------------------------
@jax.jit
def grnf_forward(x, a, params):
    B, N, F = x.shape
    nb = -(-B // B_BLK)
    B_pad = nb * B_BLK
    pad = B_pad - B
    if pad:
        x = jnp.pad(x, ((0, pad), (0, 0), (0, 0)))
        a = jnp.pad(a, ((0, pad), (0, 0), (0, 0)))
    BN = B_BLK * N

    # free metadata reshape: (B_pad, N, F) -> (B_pad*N, F)
    xf = x.reshape(B_pad * N, F)

    # block-diagonal adjacency per graph block (tiny; built once in XLA)
    a_blk = a.reshape(nb, B_BLK, N, N)
    eye = jnp.eye(B_BLK, dtype=a.dtype)
    a_bd = jnp.einsum('ij,girc->girjc', eye, a_blk).reshape(nb, BN, BN)

    dense_ws = [w for (w, _) in params['dense']]
    num_dense = len(dense_ws)
    off_b1, off_b2, off_dense, _ = _bias_layout(num_dense)
    kernel = make_grnf_kernel(B_BLK, N, num_dense, off_b1, off_b2, off_dense)

    def const_spec(shape):
        return pl.BlockSpec(shape, lambda i: (0,) * len(shape))

    out = pl.pallas_call(
        kernel,
        out_shape=jax.ShapeDtypeStruct((B_pad, DIM_TARGET), jnp.float32),
        grid=(nb,),
        in_specs=[
            pl.BlockSpec((BN, F), lambda i: (i, 0)),           # node features block
            pl.BlockSpec((None, BN, BN), lambda i: (i, 0, 0)),  # block-diag adjacency
            const_spec(params['w1s'].shape),
            const_spec(params['w2seg'].shape),
            const_spec(params['bias_packed'].shape),
        ] + [const_spec(w.shape) for w in dense_ws],
        out_specs=pl.BlockSpec((B_BLK, DIM_TARGET), lambda i: (i, 0)),
        compiler_params=pltpu.CompilerParams(
            dimension_semantics=("parallel",)),
    )(xf, a_bd, params['w1s'], params['w2seg'], params['bias_packed'], *dense_ws)
    return out[:B]


# ---------------------------------------------------------------------------
# Deterministic parameter init (shapes follow the module's __init__), with the
# GRNF weights pre-merged/pre-baked into the layouts the fused kernel expects.
# ---------------------------------------------------------------------------
def init_params(key):
    Hh, F = NUM_HIDDEN_FEATURES, DIM_FEATURES
    ks = jax.random.split(key, 9)

    # raw GRNF pieces (order-1 acts on X, order-2 on A@X)
    w1_1 = jax.random.normal(ks[0], (F, M1 * Hh), jnp.float32) / jnp.sqrt(F)
    b1_1 = jax.random.normal(ks[1], (1, M1 * Hh), jnp.float32) * 0.1
    w2_1 = jax.random.normal(ks[2], (M1, Hh), jnp.float32) / jnp.sqrt(Hh)
    b2_1 = jax.random.normal(ks[3], (1, M1), jnp.float32) * 0.1
    w1_2 = jax.random.normal(ks[4], (F, M2 * Hh), jnp.float32) / jnp.sqrt(F)
    b1_2 = jax.random.normal(ks[5], (1, M2 * Hh), jnp.float32) * 0.1
    w2_2 = jax.random.normal(ks[6], (M2, Hh), jnp.float32) / jnp.sqrt(Hh)
    b2_2 = jax.random.normal(ks[7], (1, M2), jnp.float32) * 0.1

    # fused hidden weight: rows [0:F] act on X, rows [F:2F] act on A@X
    w1x = jnp.zeros((F, MH), jnp.float32).at[:, :M1 * Hh].set(w1_1)
    w1a = jnp.zeros((F, MH), jnp.float32).at[:, M1 * Hh:].set(w1_2)
    w1s = jnp.concatenate([w1x, w1a], axis=0)                        # (2F, MH)
    b1 = jnp.concatenate([b1_1, b1_2], axis=-1)                      # (1, MH)

    # w2 baked with segment-sum structure: column k of the MH slab -> feature k // H
    w2_flat = jnp.concatenate([w2_1.reshape(1, M1 * Hh),
                               w2_2.reshape(1, M2 * Hh)], axis=-1)   # (1, MH)
    seg = (jnp.arange(MH)[:, None] // Hh ==
           jnp.arange(M_TOTAL)[None, :]).astype(jnp.float32)         # (MH, M)
    w2seg = seg * w2_flat.reshape(MH, 1)                             # (MH, M)
    b2 = jnp.concatenate([b2_1, b2_2], axis=-1)                      # (1, M)

    # dense head
    dense = []
    in_feat = NUM_RANDOM_FEATURES
    kd = jax.random.split(ks[8], NUM_DENSE_LAYERS * 2)
    for i in range(NUM_DENSE_LAYERS - 1):
        out_feat = NUM_HIDDEN_NEURONS
        w = jax.random.normal(kd[2 * i], (in_feat, out_feat), jnp.float32) / jnp.sqrt(in_feat)
        b = jax.random.normal(kd[2 * i + 1], (1, out_feat), jnp.float32) * 0.1
        dense.append((w, b))
        in_feat = out_feat
    w = jax.random.normal(kd[-2], (in_feat, DIM_TARGET), jnp.float32) / jnp.sqrt(in_feat)
    b = jax.random.normal(kd[-1], (1, DIM_TARGET), jnp.float32) * 0.1
    dense.append((w, b))

    # pack all biases into one lane-tile-aligned slab (single DMA)
    off_b1, off_b2, off_dense, total = _bias_layout(len(dense))
    bias_packed = jnp.zeros((1, total), jnp.float32)
    bias_packed = bias_packed.at[:, off_b1:off_b1 + MH].set(b1)
    bias_packed = bias_packed.at[:, off_b2:off_b2 + M_TOTAL].set(b2)
    for i, (_, bi) in enumerate(dense):
        bias_packed = bias_packed.at[:, off_dense[i]:off_dense[i] + bi.shape[1]].set(bi)

    return {
        'w1s': w1s, 'w2seg': w2seg, 'bias_packed': bias_packed,
        'dense': dense,
        # raw pieces kept only for the independent pure-JAX reference check
        'raw': dict(w1_1=w1_1, b1_1=b1_1, w2_1=w2_1, b2_1=b2_1,
                    w1_2=w1_2, b1_2=b1_2, w2_2=w2_2, b2_2=b2_2),
    }


# ---------------------------------------------------------------------------
# Pure-JAX reference using the RAW (unfused) formulation — validates the
# weight packing (w1 stacking, w2seg segment mapping, bias slab) end-to-end.
# ---------------------------------------------------------------------------
def reference_forward(x, a, params):
    hp = jax.lax.Precision.HIGHEST
    r = params['raw']
    B, N, Fd = x.shape
    xf = x.reshape(B * N, Fd)
    ax = jnp.einsum('bij,bjf->bif', a, x, precision=hp).reshape(B * N, Fd)

    z1 = jnp.maximum(jnp.dot(xf, r['w1_1'], precision=hp) + r['b1_1'], 0.0)
    p1 = z1.reshape(B, N, M1, H).sum(axis=1)
    psi1 = (p1 * r['w2_1'][None]).sum(-1) + r['b2_1']

    z2 = jnp.maximum(jnp.dot(ax, r['w1_2'], precision=hp) + r['b1_2'], 0.0)
    p2 = z2.reshape(B, N, M2, H).sum(axis=1)
    psi2 = (p2 * r['w2_2'][None]).sum(-1) + r['b2_2']

    h = jnp.concatenate([psi1, psi2], axis=-1)
    for w, b in params['dense']:
        h = jnp.dot(jnp.maximum(h, 0.0), w, precision=hp) + b
    return h


# ---------------------------------------------------------------------------
if __name__ == "__main__":
    key = jax.random.PRNGKey(0)
    kx, ka, kp = jax.random.split(key, 3)

    B, N = 2, 8  # 2 graphs, 8 nodes each (dense graph batch)
    x = jax.random.normal(kx, (B, N, DIM_FEATURES), jnp.float32)
    upper = (jax.random.uniform(ka, (B, N, N)) < 0.5).astype(jnp.float32)
    upper = jnp.triu(upper, k=1)
    a = upper + jnp.swapaxes(upper, -1, -2)   # symmetric, zero-diagonal adjacency

    params = init_params(kp)
    out = grnf_forward(x, a, params)
    jax.block_until_ready(out)
    assert out.shape == (B, DIM_TARGET)

    ref = reference_forward(x, a, params)
    assert bool(jnp.allclose(out, ref, rtol=1e-2, atol=1e-2)), "kernel != reference"

    print("KERNEL_OK")
</pallas_src>

<mosaic_0001>
module attributes {stable_mosaic.version = 11 : i64} {
  func.func @kernel(%arg0: i32, %arg1: memref<64x4xf32, #tpu.memory_space<vmem>>, %arg2: memref<1x64x64xf32, #tpu.memory_space<vmem>>, %arg3: memref<8x512xf32, #tpu.memory_space<vmem>>, %arg4: memref<512x32xf32, #tpu.memory_space<vmem>>, %arg5: memref<1x896xf32, #tpu.memory_space<vmem>>, %arg6: memref<32x32xf32, #tpu.memory_space<vmem>>, %arg7: memref<32x6xf32, #tpu.memory_space<vmem>>, %arg8: memref<8x6xf32, #tpu.memory_space<vmem>>) attributes {dimension_semantics = [#tpu.dimension_semantics<parallel>], iteration_bounds = array<i64: 1>, scalar_prefetch = 0 : i64, scratch_operands = 0 : i64, tpu.core_type = #tpu.core_type<tc>, window_params = [{transform_indices = @transform_0, window_bounds = array<i64: 64, 4>}, {transform_indices = @transform_1, window_bounds = array<i64: 1, 64, 64>}, {pipeline_mode = #tpu.pipeline_mode<synchronous>, transform_indices = @transform_2, window_bounds = array<i64: 8, 512>}, {pipeline_mode = #tpu.pipeline_mode<synchronous>, transform_indices = @transform_3, window_bounds = array<i64: 512, 32>}, {pipeline_mode = #tpu.pipeline_mode<synchronous>, transform_indices = @transform_4, window_bounds = array<i64: 1, 896>}, {pipeline_mode = #tpu.pipeline_mode<synchronous>, transform_indices = @transform_5, window_bounds = array<i64: 32, 32>}, {pipeline_mode = #tpu.pipeline_mode<synchronous>, transform_indices = @transform_6, window_bounds = array<i64: 32, 6>}, {transform_indices = @transform_7, window_bounds = array<i64: 8, 6>}]} {
    %c0 = arith.constant 0 : index
    %c0_0 = arith.constant 0 : index
    %0 = vector.load %arg1[%c0, %c0_0] : memref<64x4xf32, #tpu.memory_space<vmem>>, vector<64x4xf32>
    %c0_1 = arith.constant 0 : index
    %c0_2 = arith.constant 0 : index
    %c0_3 = arith.constant 0 : index
    %1 = vector.load %arg2[%c0_1, %c0_2, %c0_3] : memref<1x64x64xf32, #tpu.memory_space<vmem>>, vector<1x64x64xf32>
    %2 = vector.shape_cast %1 : vector<1x64x64xf32> to vector<64x64xf32>
    %cst = arith.constant dense<0.000000e+00> : vector<64x4xf32>
    %3 = tpu.matmul %2, %0, %cst {dimension_numbers = #tpu.dot_dimension_numbers<[1], [0], [0], [1], [0, 0, 1, 1], [], []>} : vector<64x64xf32>, vector<64x4xf32>, vector<64x4xf32> -> vector<64x4xf32>
    %4 = tpu.concatenate %0, %3 in 1 : vector<64x4xf32>, vector<64x4xf32> -> vector<64x8xf32>
    %c0_4 = arith.constant 0 : index
    %c0_5 = arith.constant 0 : index
    %5 = vector.load %arg5[%c0_4, %c0_5] : memref<1x896xf32, #tpu.memory_space<vmem>>, vector<1x512xf32>
    %c0_6 = arith.constant 0 : index
    %c0_7 = arith.constant 0 : index
    %6 = vector.load %arg3[%c0_6, %c0_7] : memref<8x512xf32, #tpu.memory_space<vmem>>, vector<8x512xf32>
    %cst_8 = arith.constant dense<0.000000e+00> : vector<64x512xf32>
    %7 = tpu.matmul %4, %6, %cst_8 {dimension_numbers = #tpu.dot_dimension_numbers<[1], [0], [0], [1], [0, 0, 1, 1], [], []>} : vector<64x8xf32>, vector<8x512xf32>, vector<64x512xf32> -> vector<64x512xf32>
    %8 = vector.broadcast %5 : vector<1x512xf32> to vector<64x512xf32>
    %9 = arith.addf %7, %8 : vector<64x512xf32>
    %cst_9 = arith.constant 0.000000e+00 : f32
    %10 = vector.broadcast %cst_9 : f32 to vector<64x512xf32>
    %11 = arith.maximumf %9, %10 : vector<64x512xf32>
    %c0_10 = arith.constant 0 : index
    %c0_11 = arith.constant 0 : index
    %12 = vector.load %arg4[%c0_10, %c0_11] : memref<512x32xf32, #tpu.memory_space<vmem>>, vector<512x32xf32>
    %cst_12 = arith.constant dense<0.000000e+00> : vector<64x32xf32>
    %13 = tpu.matmul %11, %12, %cst_12 {dimension_numbers = #tpu.dot_dimension_numbers<[1], [0], [0], [1], [0, 0, 1, 1], [], []>} : vector<64x512xf32>, vector<512x32xf32>, vector<64x32xf32> -> vector<64x32xf32>
    %14 = vector.shape_cast %13 : vector<64x32xf32> to vector<8x8x32xf32>
    %cst_13 = arith.constant dense<0.000000e+00> : vector<8x32xf32>
    %15 = vector.multi_reduction <add>, %14, %cst_13 [1] : vector<8x8x32xf32> to vector<8x32xf32>
    %c0_14 = arith.constant 0 : index
    %c512 = arith.constant 512 : index
    %16 = vector.load %arg5[%c0_14, %c512] : memref<1x896xf32, #tpu.memory_space<vmem>>, vector<1x32xf32>
    %17 = vector.broadcast %16 : vector<1x32xf32> to vector<8x32xf32>
    %18 = arith.addf %15, %17 : vector<8x32xf32>
    %cst_15 = arith.constant 0.000000e+00 : f32
    %19 = vector.broadcast %cst_15 : f32 to vector<8x32xf32>
    %20 = arith.maximumf %18, %19 : vector<8x32xf32>
    %c0_16 = arith.constant 0 : index
    %c0_17 = arith.constant 0 : index
    %21 = vector.load %arg6[%c0_16, %c0_17] : memref<32x32xf32, #tpu.memory_space<vmem>>, vector<32x32xf32>
    %cst_18 = arith.constant dense<0.000000e+00> : vector<8x32xf32>
    %22 = tpu.matmul %20, %21, %cst_18 {dimension_numbers = #tpu.dot_dimension_numbers<[1], [0], [0], [1], [0, 0, 1, 1], [], []>} : vector<8x32xf32>, vector<32x32xf32>, vector<8x32xf32> -> vector<8x32xf32>
    %c0_19 = arith.constant 0 : index
    %c640 = arith.constant 640 : index
    %23 = vector.load %arg5[%c0_19, %c640] : memref<1x896xf32, #tpu.memory_space<vmem>>, vector<1x32xf32>
    %24 = vector.broadcast %23 : vector<1x32xf32> to vector<8x32xf32>
    %25 = arith.addf %22, %24 : vector<8x32xf32>
    %cst_20 = arith.constant 0.000000e+00 : f32
    %26 = vector.broadcast %cst_20 : f32 to vector<8x32xf32>
    %27 = arith.maximumf %25, %26 : vector<8x32xf32>
    %c0_21 = arith.constant 0 : index
    %c0_22 = arith.constant 0 : index
    %28 = vector.load %arg7[%c0_21, %c0_22] : memref<32x6xf32, #tpu.memory_space<vmem>>, vector<32x6xf32>
    %cst_23 = arith.constant dense<0.000000e+00> : vector<8x6xf32>
    %29 = tpu.matmul %27, %28, %cst_23 {dimension_numbers = #tpu.dot_dimension_numbers<[1], [0], [0], [1], [0, 0, 1, 1], [], []>} : vector<8x32xf32>, vector<32x6xf32>, vector<8x6xf32> -> vector<8x6xf32>
    %c0_24 = arith.constant 0 : index
    %c768 = arith.constant 768 : index
    %30 = vector.load %arg5[%c0_24, %c768] : memref<1x896xf32, #tpu.memory_space<vmem>>, vector<1x6xf32>
    %31 = vector.broadcast %30 : vector<1x6xf32> to vector<8x6xf32>
    %32 = arith.addf %29, %31 : vector<8x6xf32>
    %c0_25 = arith.constant 0 : index
    %c0_26 = arith.constant 0 : index
    %33 = vector.load %arg8[%c0_25, %c0_26] : memref<8x6xf32, #tpu.memory_space<vmem>>, vector<8x6xf32>
    tpu.vector_store %arg8[%c0_25, %c0_26], %32 {strides = array<i32>} : memref<8x6xf32, #tpu.memory_space<vmem>>, vector<8x6xf32>,
    return
  }
  func.func @transform_0(%arg0: i32) -> (i32, i32) {
    %c0_i32 = arith.constant 0 : i32
    %c0_i32_0 = arith.constant 0 : i32
    return %arg0, %c0_i32 : i32, i32
  }
  func.func @transform_1(%arg0: i32) -> (i32, i32, i32) {
    %c0_i32 = arith.constant 0 : i32
    %c0_i32_0 = arith.constant 0 : i32
    %c0_i32_1 = arith.constant 0 : i32
    return %arg0, %c0_i32, %c0_i32_0 : i32, i32, i32
  }
  func.func @transform_2(%arg0: i32) -> (i32, i32) {
    %c0_i32 = arith.constant 0 : i32
    %c0_i32_0 = arith.constant 0 : i32
    %c0_i32_1 = arith.constant 0 : i32
    return %c0_i32, %c0_i32_0 : i32, i32
  }
  func.func @transform_3(%arg0: i32) -> (i32, i32) {
    %c0_i32 = arith.constant 0 : i32
    %c0_i32_0 = arith.constant 0 : i32
    %c0_i32_1 = arith.constant 0 : i32
    return %c0_i32, %c0_i32_0 : i32, i32
  }
  func.func @transform_4(%arg0: i32) -> (i32, i32) {
    %c0_i32 = arith.constant 0 : i32
    %c0_i32_0 = arith.constant 0 : i32
    %c0_i32_1 = arith.constant 0 : i32
    return %c0_i32, %c0_i32_0 : i32, i32
  }
  func.func @transform_5(%arg0: i32) -> (i32, i32) {
    %c0_i32 = arith.constant 0 : i32
    %c0_i32_0 = arith.constant 0 : i32
    %c0_i32_1 = arith.constant 0 : i32
    return %c0_i32, %c0_i32_0 : i32, i32
  }
  func.func @transform_6(%arg0: i32) -> (i32, i32) {
    %c0_i32 = arith.constant 0 : i32
    %c0_i32_0 = arith.constant 0 : i32
    %c0_i32_1 = arith.constant 0 : i32
    return %c0_i32, %c0_i32_0 : i32, i32
  }
  func.func @transform_7(%arg0: i32) -> (i32, i32) {
    %c0_i32 = arith.constant 0 : i32
    %c0_i32_0 = arith.constant 0 : i32
    return %arg0, %c0_i32 : i32, i32
  }
}

</mosaic_0001>

<bundles_post_ra>
// kernel: grnf_forward.1
= control target key start
LH: loop header
LB: loop body
LE: loop exit
PB: predicated region body
PF: predicated region fallthrough
CT: control target
= control target key end

     0   :  { %vm42_vm0 = vcmask 523264   ;;  %v1408_v24 = vmov 0.0   ;;  %vm204_vm1 = vcmask 31744   ;;  %vm239_vm2 = vcmask 64512   ;;  %s1955_s0 = inlined_call_operand.vmem [shape: f32[64,4], index: 0, kind: input, shape index: {}]   ;;  %s1956_s1 = inlined_call_operand.vmem [shape: f32[1,64,64], index: 1, kind: input, shape index: {}]   ;;  %s1957_s2 = inlined_call_operand.vmem [shape: f32[8,512], index: 2, kind: input, shape index: {}]   ;;  %s1958_s3 = inlined_call_operand.vmem [shape: f32[512,32], index: 3, kind: input, shape index: {}]   ;;  %s1959_s4 = inlined_call_operand.vmem [shape: f32[1,896], index: 4, kind: input, shape index: {}]   ;;  %s1960_s5 = inlined_call_operand.vmem [shape: f32[32,32], index: 5, kind: input, shape index: {}]   ;;  %s1961_s6 = inlined_call_operand.vmem [shape: f32[32,6], index: 6, kind: input, shape index: {}]   ;;  %s1962_s7 = inlined_call_operand.vmem [shape: f32[8,6], index: 7, kind: output, shape index: {}]  }
   0x1   :  { %v1455_v0 = vld [vmem:[%s1955_s0] sm:$0xff]  ;;  %v1460_v1 = vld [vmem:[%s1955_s0 + $0x8] sm:$0xff]  ;;  %v1465_v2 = vld [vmem:[%s1955_s0 + $0x10] sm:$0xff]  ;;  %328 = vmatprep.mubr.f32.mxu1 %v1408_v24  ;;  %vm1411_vm3 = vmmov 0   ;;  %vm796_vm4 = vcmask 261120   ;;  %vm896_vm5 = vcmask 1041409  }
   0x2   :  { %v1296_v3 = vpack.c.bf16 %v1460_v1, %v1455_v0  ;;  %v1472_v4 = vld [vmem:[%s1955_s0 + $0x18] sm:$0xff]  ;;  %v1479_v6 = vld [vmem:[%s1955_s0 + $0x20] sm:$0xff]  ;;  %v1484_v7 = vld [vmem:[%s1955_s0 + $0x28] sm:$0xff]  ;;  %vm899_vm6 = vcmask 1042434   ;;  %vm902_vm7 = vcmask 1043459   ;;  %vm905_vm8 = vcmask 1044484  }
   0x3   :  { %v1300_v5 = vpack.c.bf16 %v1472_v4, %v1465_v2  ;;  %v34_v8 = vld [vmem:[%s1956_s1] sm:$0xff]  ;;  %v1304_v9 = vpack.c.bf16 %v1484_v7, %v1479_v6  ;;  %v1495_v10 = vld [vmem:[%s1955_s0 + $0x30] sm:$0xff]  ;;  %v1500_v11 = vld [vmem:[%s1955_s0 + $0x38] sm:$0xff]  ;;  %vm908_vm9 = vcmask 1045509   ;;  %vm911_vm10 = vcmask 1046534  }
   0x4   :  { %1297 = vmatprep.subr.bf16.mxu0 %v1296_v3  ;;  %1262 = vmatprep.mubr.msk.f32.mxu0 %vm42_vm0, %v34_v8  ;;  %v1308_v12 = vpack.c.bf16 %v1500_v11, %v1495_v10  ;;  %v35_v13 = vld [vmem:[%s1956_s1 + $0x8] sm:$0xff]  ;;  %v36_v14 = vld [vmem:[%s1956_s1 + $0x10] sm:$0xff]  ;;  %v37_v15 = vld [vmem:[%s1956_s1 + $0x18] sm:$0xff]  ;;  %vm914_vm11 = vcmask 1047559   ;;  %vm1073_vm12 = vcmask 48128  }
   0x5   :  { %1299 = vmatpush3.bf16.msra.mxu0 %v1296_v3  ;;  %v38_v16 = vld [vmem:[%s1956_s1 + $0x20] sm:$0xff]  ;;  %v39_v17 = vld [vmem:[%s1956_s1 + $0x28] sm:$0xff]  ;;  %v40_v18 = vld [vmem:[%s1956_s1 + $0x30] sm:$0xff] }
   0x6   :  { %1301 = vmatprep.subr.bf16.mxu0 %v1300_v5  ;;  %v41_v19 = vld [vmem:[%s1956_s1 + $0x38] sm:$0xff]  ;;  %v216_v21 = vld [vmem:[%s1957_s2 + $0x10] sm:$0xff]  ;;  %v215_v22 = vld [vmem:[%s1957_s2 + $0x8] sm:$0xff]  ;;  %s1409_s1 = smov 4  }
   0x7   :  { %v217_v20 = vld [vmem:[%s1957_s2 + $0x18] sm:$0xff]  ;;  %264 = vmatprep.subr.mxu1 %v215_v22  ;;  %v214_v23 = vld [vmem:[%s1957_s2] sm:$0xff]  ;;  %v539_v34 = vld [vmem:[%s1958_s3 + $0x88] sm:$0xff] }
   0x8   :  { %265 = vmatpush1.msra.mxu1 %v214_v23  ;;  %v538_v33 = vld [vmem:[%s1958_s3 + $0x80] sm:$0xff]  ;;  %v571_v37 = vld [vmem:[%s1958_s3 + $0x188] sm:$0xff]  ;;  %v540_v43 = vld [vmem:[%s1958_s3 + $0x90] sm:$0xff] }
   0x9   :  { %1303 = vmatpush3.bf16.msra.mxu0 %v1300_v5  ;;  %v1312_v35 = vpack.c.bf16 %v539_v34, %v538_v33  ;;  %v570_v36 = vld [vmem:[%s1958_s3 + $0x180] sm:$0xff]  ;;  %v523_v40 = vld [vmem:[%s1958_s3 + $0x8] sm:$0xff]  ;;  %v541_v44 = vld [vmem:[%s1958_s3 + $0x98] sm:$0xff] }
   0xa   :  { %1305 = vmatprep.subr.bf16.mxu0 %v1304_v9  ;;  %v1558_v38 = vpack.c.bf16 %v571_v37, %v570_v36  ;;  %v522_v39 = vld [vmem:[%s1958_s3] sm:$0xff]  ;;  %v555_v42 = vld [vmem:[%s1958_s3 + $0x108] sm:$0xff]  ;;  %v572_v45 = vld [vmem:[%s1958_s3 + $0x190] sm:$0xff]  ;;  %v1316_v53 = vpack.c.bf16 %v541_v44, %v540_v43 }
   0xb   :  { %1313 = vmatprep.subr.bf16.mxu1 %v1312_v35  ;;  %v554_v41 = vld [vmem:[%s1958_s3 + $0x100] sm:$0xff]  ;;  %v573_v46 = vld [vmem:[%s1958_s3 + $0x198] sm:$0xff]  ;;  %v1314_v48 = vpack.c.bf16 %v523_v40, %v522_v39  ;;  %v524_v50 = vld [vmem:[%s1958_s3 + $0x10] sm:$0xff] }
   0xc   :  { %v1585_v49 = vpack.c.bf16 %v555_v42, %v554_v41  ;;  %v525_v51 = vld [vmem:[%s1958_s3 + $0x18] sm:$0xff]  ;;  %v1595_v54 = vpack.c.bf16 %v573_v46, %v572_v45  ;;  %v556_v55 = vld [vmem:[%s1958_s3 + $0x110] sm:$0xff]  ;;  %v542_v57 = vld [vmem:[%s1958_s3 + $0xa0] sm:$0xff] }
   0xd   :  { %1307 = vmatpush3.bf16.msra.mxu0 %v1304_v9  ;;  %v557_v56 = vld [vmem:[%s1958_s3 + $0x118] sm:$0xff]  ;;  %v543_v58 = vld [vmem:[%s1958_s3 + $0xa8] sm:$0xff]  ;;  %v574_v59 = vld [vmem:[%s1958_s3 + $0x1a0] sm:$0xff]  ;;  %v1318_v63 = vpack.c.bf16 %v525_v51, %v524_v50 }
   0xe   :  { %1309 = vmatprep.subr.bf16.mxu0 %v1308_v12  ;;  %v575_v60 = vld [vmem:[%s1958_s3 + $0x1a8] sm:$0xff]  ;;  %v526_v3 = vld [vmem:[%s1958_s3 + $0x20] sm:$0xff]  ;;  %v1320_v9 = vpack.c.bf16 %v543_v58, %v542_v57  ;;  %v529_v22 = vld [vmem:[%s1958_s3 + $0x38] sm:$0xff] }
   0xf   :  { %v527_v5 = vld [vmem:[%s1958_s3 + $0x28] sm:$0xff]  ;;  %v530_v35 = vld [vmem:[%s1958_s3 + $0x40] sm:$0xff]  ;;  %v548_v43 = vld [vmem:[%s1958_s3 + $0xd0] sm:$0xff] }
  0x10   :  { %v531_v36 = vld [vmem:[%s1958_s3 + $0x48] sm:$0xff]  ;;  %v562_v41 = vld [vmem:[%s1958_s3 + $0x140] sm:$0xff]  ;;  %v580_v44 = vld [vmem:[%s1958_s3 + $0x1d0] sm:$0xff] }
  0x11   :  { %1311 = vmatpush3.bf16.msra.mxu0 %v1308_v12  ;;  %v1631_v12 = vpack.c.bf16 %v575_v60, %v574_v59  ;;  %v563_v42 = vld [vmem:[%s1958_s3 + $0x148] sm:$0xff]  ;;  %v581_v45 = vld [vmem:[%s1958_s3 + $0x1d8] sm:$0xff]  ;;  %v532_v50 = vld [vmem:[%s1958_s3 + $0x50] sm:$0xff] }
  0x12   :  { %377 = vmatprep.subr.mxu0 %v217_v20  ;;  %v533_v51 = vld [vmem:[%s1958_s3 + $0x58] sm:$0xff]  ;;  %v551_v58 = vld [vmem:[%s1958_s3 + $0xe8] sm:$0xff]  ;;  %v582_v59 = vld [vmem:[%s1958_s3 + $0x1e0] sm:$0xff] }
  0x13   :  { %v583_v60 = vld [vmem:[%s1958_s3 + $0x1e8] sm:$0xff] }
  0x14   :  { %1263 = vmatmul.mubr.msk.f32.vlgmr.msra.gmra.mrb[0].mxu0 %vm42_vm0, %v35_v13  ;;  %v558_v13 = vld [vmem:[%s1958_s3 + $0x120] sm:$0xff] }
  0x15   :  { %1265 = vmatprep.mubr.msk.f32.mxu0 %vm42_vm0, %v36_v14  ;;  %378 = vmatpush1.msra.mxu0 %v216_v21  ;;  %v559_v14 = vld [vmem:[%s1958_s3 + $0x128] sm:$0xff]  ;;  %v528_v21 = vld [vmem:[%s1958_s3 + $0x30] sm:$0xff] }
  0x16   :  { %1345 = vmatprep.subr.bf16.mxu0 %v1558_v38  ;;  %v1658_v20 = vpack.c.bf16 %v559_v14, %v558_v13  ;;  %v1326_v33 = vpack.c.bf16 %v529_v22, %v528_v21  ;;  %v1775_v13 = vpack.c.bf16 %v583_v60, %v582_v59  ;;  %v536_v22 = vld [vmem:[%s1958_s3 + $0x70] sm:$0xff] }
  0x18   :  { %1266 = vmatmul.mubr.msk.f32.gmra.mrb[2].mxu0 %vm42_vm0, %v37_v15  ;;  %v544_v15 = vld [vmem:[%s1958_s3 + $0xb0] sm:$0xff] }
  0x19   :  { %1268 = vmatprep.mubr.msk.f32.mxu0 %vm42_vm0, %v38_v16  ;;  %v576_v16 = vld [vmem:[%s1958_s3 + $0x1b0] sm:$0xff] }
  0x1c   :  { %1269 = vmatmul.mubr.msk.f32.gmra.mrb[4].mxu0 %vm42_vm0, %v39_v17  ;;  %v577_v17 = vld [vmem:[%s1958_s3 + $0x1b8] sm:$0xff] }
  0x1d   :  { %1271 = vmatprep.mubr.msk.f32.mxu0 %vm42_vm0, %v40_v18  ;;  %v1667_v23 = vpack.c.bf16 %v577_v17, %v576_v16  ;;  %v567_v16 = vld [vmem:[%s1958_s3 + $0x168] sm:$0xff] }
  0x20   :  { %1272 = vmatmul.mubr.msk.f32.gmra.mrb[6].mxu0 %vm42_vm0, %v41_v19  ;;  %v1322_v19 = vpack.c.bf16 %v527_v5, %v526_v3 }
  0x21   :  { %441 = vmatprep.mubr.f32.mxu0 %v1408_v24 }
  0xe7   :  { %v1264_v25 = vpop.f32.mrb[0].mxu0 }
  0xe8   :  { %v133_v26 = vpop.f32.mrb[1].mxu0 }
  0xe9   :  { %180 = vrot.lane.b32.xlu0 %v133_v26, %s1409_s1  ;;  %v561_v26 = vld [vmem:[%s1958_s3 + $0x138] sm:$0xff] }
  0xeb   :  { %v1267_v27 = vpop.f32.mrb[2].mxu0 }
  0xec   :  { %v143_v28 = vpop.f32.mrb[3].mxu0 }
  0xed   :  { %182 = vrot.lane.b32.xlu0 %v1264_v25, %s1409_s1  ;;  %184 = vrot.lane.b32.xlu1 %v143_v28, %s1409_s1  ;;  %v560_v25 = vld [vmem:[%s1958_s3 + $0x130] sm:$0xff] }
  0xee   :  { %v1692_v34 = vpack.c.bf16 %v561_v26, %v560_v25  ;;  %v585_v25 = vld [vmem:[%s1958_s3 + $0x1f8] sm:$0xff] }
  0xef   :  { %v1270_v29 = vpop.f32.mrb[4].mxu0 }
  0xf0   :  { %v153_v30 = vpop.f32.mrb[5].mxu0 }
  0xf1   :  { %186 = vrot.lane.b32.xlu1 %v1267_v27, %s1409_s1  ;;  %188 = vrot.lane.b32.xlu0 %v153_v30, %s1409_s1  ;;  %v546_v27 = vld [vmem:[%s1958_s3 + $0xc0] sm:$0xff] }
  0xf2   :  { %v578_v30 = vld [vmem:[%s1958_s3 + $0x1c0] sm:$0xff] }
  0xf3   :  { %v1273_v31 = vpop.f32.mrb[6].mxu0 }
  0xf4   :  { %v163_v32 = vpop.f32.mrb[7].mxu0 }
  0xf5   :  { %190 = vrot.lane.b32.xlu1 %v1270_v29, %s1409_s1  ;;  %192 = vrot.lane.b32.xlu0 %v163_v32, %s1409_s1  ;;  %v547_v29 = vld [vmem:[%s1958_s3 + $0xc8] sm:$0xff] }
  0xf6   :  { %v1328_v39 = vpack.c.bf16 %v547_v29, %v546_v27  ;;  %v569_v29 = vld [vmem:[%s1958_s3 + $0x178] sm:$0xff] }
  0xf9   :  { %194 = vrot.lane.b32.xlu1 %v1273_v31, %s1409_s1  ;;  %v579_v31 = vld [vmem:[%s1958_s3 + $0x1c8] sm:$0xff] }
  0xfa   :  { %v1703_v40 = vpack.c.bf16 %v579_v31, %v578_v30  ;;  %v219_v31 = vlaneseq }
 0x15b   :  { %v181_v47 = vpop.permute.xlu0 %180 }
 0x15c   :  { %v205_v52 = vsel %vm204_vm1, %v1455_v0, %v181_v47  ;;  %v1620_v0 = vpack.c.bf16 %v557_v56, %v556_v55  ;;  %v1330_v47 = vpack.c.bf16 %v531_v36, %v530_v35  ;;  %v565_v55 = vld [vmem:[%s1958_s3 + $0x158] sm:$0xff]  ;;  %v550_v56 = vld [vmem:[%s1958_s3 + $0xe0] sm:$0xff] }
 0x15d   :  { %1087 = vmatmul.mubr.msk.f32.vlgmr.msra.gmra.mrb[0].mxu1 %vm239_vm2, %v205_v52  ;;  %1095 = vmatmul.mubr.msk.f32.vlgmr.msra.gmra.mrb[8].mxu0 %vm239_vm2, %v205_v52  ;;  %v1739_v52 = vpack.c.bf16 %v581_v45, %v580_v44  ;;  %v1336_v5 = vpack.c.bf16 %v551_v58, %v550_v56  ;;  %v213_v36 = vld [vmem:[%s1959_s4] sm:$0xf] }
 0x15e   :  { %334 = vmatprep.mubr.f32.mxu1 %v1408_v24  ;;  %447 = vmatprep.mubr.f32.mxu0 %v1408_v24 }
 0x15f   :  { %v183_v61 = vpop.permute.xlu0 %182  ;;  %v185_v62 = vpop.permute.xlu1 %184  ;;  %1315 = vmatpush3.bf16.msra.mxu1 %v1314_v48  ;;  %1347 = vmatpush3.bf16.msra.mxu0 %v1585_v49  ;;  %v1730_v48 = vpack.c.bf16 %v563_v42, %v562_v41 }
 0x160   :  { %v206_v8 = vsel %vm204_vm1, %v1460_v1, %v183_v61  ;;  %1317 = vmatprep.subr.bf16.mxu1 %v1316_v53  ;;  %1349 = vmatprep.subr.bf16.mxu0 %v1595_v54  ;;  %v545_v1 = vld [vmem:[%s1958_s3 + $0xb8] sm:$0xff]  ;;  %v207_v18 = vsel %vm204_vm1, %v1465_v2, %v185_v62  ;;  %v564_v53 = vld [vmem:[%s1958_s3 + $0x150] sm:$0xff]  ;;  %v1334_v62 = vpack.c.bf16 %v533_v51, %v532_v50 }
 0x161   :  { %1088 = vmatmul.mubr.msk.f32.gmra.mrb[2].mxu1 %vm239_vm2, %v206_v8  ;;  %1096 = vmatmul.mubr.msk.f32.gmra.mrb[10].mxu0 %vm239_vm2, %v206_v8  ;;  %v1324_v2 = vpack.c.bf16 %v545_v1, %v544_v15  ;;  %v534_v8 = vld [vmem:[%s1958_s3 + $0x60] sm:$0xff] }
 0x162   :  { %340 = vmatprep.mubr.f32.mxu1 %v1408_v24  ;;  %453 = vmatprep.mubr.f32.mxu0 %v1408_v24  ;;  %v566_v1 = vld [vmem:[%s1958_s3 + $0x160] sm:$0xff] }
 0x163   :  { %1319 = vmatpush3.bf16.msra.mxu1 %v1318_v63  ;;  %1351 = vmatpush3.bf16.msra.mxu0 %v1620_v0  ;;  %v187_v28 = vpop.permute.xlu1 %186  ;;  %v189_v32 = vpop.permute.xlu0 %188  ;;  %v1764_v63 = vpack.c.bf16 %v565_v55, %v564_v53  ;;  %v1799_v17 = vpack.c.bf16 %v567_v16, %v566_v1 }
 0x164   :  { %1321 = vmatprep.subr.bf16.mxu1 %v1320_v9  ;;  %1353 = vmatprep.subr.bf16.mxu0 %v1631_v12  ;;  %v208_v37 = vsel %vm204_vm1, %v1472_v4, %v187_v28  ;;  %v549_v4 = vld [vmem:[%s1958_s3 + $0xd8] sm:$0xff]  ;;  %v209_v46 = vsel %vm204_vm1, %v1479_v6, %v189_v32  ;;  %v535_v9 = vld [vmem:[%s1958_s3 + $0x68] sm:$0xff]  ;;  %v568_v28 = vld [vmem:[%s1958_s3 + $0x170] sm:$0xff]  ;;  %v220_v32 = vshrl.u32 %v219_v31, 7 }
 0x165   :  { %1089 = vmatmul.mubr.msk.f32.gmra.mrb[4].mxu1 %vm239_vm2, %v207_v18  ;;  %1097 = vmatmul.mubr.msk.f32.gmra.mrb[12].mxu0 %vm239_vm2, %v207_v18  ;;  %v1332_v6 = vpack.c.bf16 %v549_v4, %v548_v43  ;;  %v1338_v14 = vpack.c.bf16 %v535_v9, %v534_v8  ;;  %v553_v18 = vld [vmem:[%s1958_s3 + $0xf8] sm:$0xff]  ;;  %v1828_v30 = vpack.c.bf16 %v569_v29, %v568_v28 }
 0x166   :  { %346 = vmatprep.mubr.f32.mxu1 %v1408_v24  ;;  %459 = vmatprep.mubr.f32.mxu0 %v1408_v24  ;;  %v229_v35 = vsub.s32 2, %v220_v32 }
 0x167   :  { %1323 = vmatpush3.bf16.msra.mxu1 %v1322_v19  ;;  %1355 = vmatpush3.bf16.msra.mxu0 %v1658_v20  ;;  %v191_v57 = vpop.permute.xlu1 %190  ;;  %v193_v61 = vpop.permute.xlu0 %192  ;;  %v584_v19 = vld [vmem:[%s1958_s3 + $0x1f0] sm:$0xff] }
 0x168   :  { %1325 = vmatprep.subr.bf16.mxu1 %v1324_v2  ;;  %1357 = vmatprep.subr.bf16.mxu0 %v1667_v23  ;;  %v210_v3 = vsel %vm204_vm1, %v1484_v7, %v191_v57  ;;  %v211_v7 = vsel %vm204_vm1, %v1495_v10, %v193_v61  ;;  %v537_v2 = vld [vmem:[%s1958_s3 + $0x78] sm:$0xff]  ;;  %v1820_v27 = vpack.c.bf16 %v585_v25, %v584_v19 }
 0x169   :  { %1090 = vmatmul.mubr.msk.f32.gmra.mrb[6].mxu1 %vm239_vm2, %v208_v37  ;;  %1098 = vmatmul.mubr.msk.f32.gmra.mrb[14].mxu0 %vm239_vm2, %v208_v37  ;;  %v1342_v26 = vpack.c.bf16 %v537_v2, %v536_v22  ;;  %v225_v37 = vsub.s32 1, %v220_v32  ;;  %v1838_v42 = vrot.slane %v213_v36, %v229_v35 }
 0x16a   :  { %352 = vmatprep.mubr.f32.mxu1 %v1408_v24  ;;  %465 = vmatprep.mubr.f32.mxu0 %v1408_v24 }
 0x16b   :  { %1327 = vmatpush3.bf16.msra.mxu1 %v1326_v33  ;;  %1359 = vmatpush3.bf16.msra.mxu0 %v1692_v34  ;;  %v195_v15 = vpop.permute.xlu1 %194  ;;  %v221_v33 = vsub.s32 0, %v220_v32  ;;  %v1840_v43 = vrot.slane %v213_v36, %v225_v37 }
 0x16c   :  { %1329 = vmatprep.subr.bf16.mxu1 %v1328_v39  ;;  %1361 = vmatprep.subr.bf16.mxu0 %v1703_v40  ;;  %v212_v10 = vsel %vm204_vm1, %v1500_v11, %v195_v15  ;;  %v552_v11 = vld [vmem:[%s1958_s3 + $0xf0] sm:$0xff]  ;;  %v233_v39 = vsub.s32 3, %v220_v32 }
 0x16d   :  { %1091 = vmatmul.mubr.msk.f32.gmra.mrb[8].mxu1 %vm239_vm2, %v209_v46  ;;  %1099 = vmatmul.mubr.msk.f32.gmra.mrb[16].mxu0 %vm239_vm2, %v209_v46  ;;  %v1340_v21 = vpack.c.bf16 %v553_v18, %v552_v11  ;;  %v1836_v41 = vrot.slane %v213_v36, %v221_v33 }
 0x16e   :  { %358 = vmatprep.mubr.f32.mxu1 %v1408_v24  ;;  %471 = vmatprep.mubr.f32.mxu0 %v1408_v24  ;;  %v1842_v4 = vrot.slane %v213_v36, %v233_v39 }
 0x16f   :  { %1331 = vmatpush3.bf16.msra.mxu1 %v1330_v47  ;;  %1363 = vmatpush3.bf16.msra.mxu0 %v1730_v48 }
 0x170   :  { %1333 = vmatprep.subr.bf16.mxu1 %v1332_v6  ;;  %1365 = vmatprep.subr.bf16.mxu0 %v1739_v52 }
 0x171   :  { %1092 = vmatmul.mubr.msk.f32.gmra.mrb[10].mxu1 %vm239_vm2, %v210_v3  ;;  %1100 = vmatmul.mubr.msk.f32.gmra.mrb[18].mxu0 %vm239_vm2, %v210_v3 }
 0x172   :  { %364 = vmatprep.mubr.f32.mxu1 %v1408_v24  ;;  %477 = vmatprep.mubr.f32.mxu0 %v1408_v24 }
 0x173   :  { %1335 = vmatpush3.bf16.msra.mxu1 %v1334_v62  ;;  %1367 = vmatpush3.bf16.msra.mxu0 %v1764_v63 }
 0x174   :  { %1337 = vmatprep.subr.bf16.mxu1 %v1336_v5  ;;  %1369 = vmatprep.subr.bf16.mxu0 %v1775_v13 }
 0x175   :  { %1093 = vmatmul.mubr.msk.f32.gmra.mrb[12].mxu1 %vm239_vm2, %v211_v7  ;;  %1101 = vmatmul.mubr.msk.f32.gmra.mrb[20].mxu0 %vm239_vm2, %v211_v7 }
 0x176   :  { %370 = vmatprep.mubr.f32.mxu1 %v1408_v24  ;;  %483 = vmatprep.mubr.f32.mxu0 %v1408_v24 }
 0x177   :  { %1339 = vmatpush3.bf16.msra.mxu1 %v1338_v14  ;;  %1371 = vmatpush3.bf16.msra.mxu0 %v1799_v17 }
 0x178   :  { %1341 = vmatprep.subr.bf16.mxu1 %v1340_v21  ;;  %1373 = vmatprep.subr.bf16.mxu0 %v1820_v27 }
 0x179   :  { %1094 = vmatmul.mubr.msk.f32.gmra.mrb[14].mxu1 %vm239_vm2, %v212_v10  ;;  %1102 = vmatmul.mubr.msk.f32.gmra.mrb[22].mxu0 %vm239_vm2, %v212_v10 }
 0x17b   :  { %1343 = vmatpush3.bf16.msra.mxu1 %v1342_v26  ;;  %1375 = vmatpush3.bf16.msra.mxu0 %v1828_v30 }
 0x17c   :  { %1388 = vmatprep.subr.bf16.mxu1 %v1558_v38 }
 0x230   :  { %v330_v44 = vpop.f32.mrb[0].mxu1  ;;  %v443_v38 = vpop.f32.mrb[8].mxu0 }
 0x231   :  { %v331_v45 = vadd.f32 %v330_v44, %v1836_v41  ;;  %v444_v46 = vadd.f32 %v443_v38, %v1838_v42  ;;  %v332_v47 = vpop.f32.mrb[1].mxu1  ;;  %v445_v50 = vpop.f32.mrb[9].mxu0 }
 0x232   :  { %v333_v51 = vadd.f32 %v332_v47, %v1840_v43  ;;  %v446_v6 = vadd.f32 %v445_v50, %v1842_v4 }
 0x233   :  { %v490_v58 = vmax.f32 %v331_v45, 0.0  ;;  %v492_v59 = vmax.f32 %v444_v46, 0.0 }
 0x234   :  { %v491_v53 = vmax.f32 %v333_v51, 0.0  ;;  %v493_v55 = vmax.f32 %v446_v6, 0.0  ;;  %v336_v56 = vpop.f32.mrb[2].mxu1  ;;  %v449_v57 = vpop.f32.mrb[10].mxu0 }
 0x235   :  { %v337_v60 = vadd.f32 %v336_v56, %v1836_v41  ;;  %v450_v61 = vadd.f32 %v449_v57, %v1838_v42  ;;  %v338_v62 = vpop.f32.mrb[3].mxu1  ;;  %v451_v3 = vpop.f32.mrb[11].mxu0 }
 0x236   :  { %v339_v5 = vadd.f32 %v338_v62, %v1840_v43  ;;  %v452_v8 = vadd.f32 %v451_v3, %v1842_v4  ;;  %650 = vmatprep.mubr.f32.mxu1 %v491_v53  ;;  %755 = vmatprep.mubr.f32.mxu0 %v493_v55 }
 0x237   :  { %651 = vmatmul.mubr.f32.vlgmr.msra.gmra.mrb[16].mxu1 %v490_v58  ;;  %756 = vmatmul.mubr.f32.vlgmr.msra.gmra.mrb[24].mxu0 %v492_v59  ;;  %v494_v10 = vmax.f32 %v337_v60, 0.0  ;;  %v496_v1 = vmax.f32 %v450_v61, 0.0 }
 0x238   :  { %v495_v9 = vmax.f32 %v339_v5, 0.0  ;;  %v497_v7 = vmax.f32 %v452_v8, 0.0  ;;  %1396 = vmatpush3.bf16.msra.mxu1 %v1585_v49  ;;  %v342_v14 = vpop.f32.mrb[4].mxu1  ;;  %v455_v15 = vpop.f32.mrb[12].mxu0 }
 0x239   :  { %v343_v16 = vadd.f32 %v342_v14, %v1836_v41  ;;  %v456_v11 = vadd.f32 %v455_v15, %v1838_v42  ;;  %v344_v18 = vpop.f32.mrb[5].mxu1  ;;  %v457_v19 = vpop.f32.mrb[13].mxu0  ;;  %1389 = vmatprep.subr.bf16.mxu1 %v1595_v54 }
 0x23a   :  { %v345_v21 = vadd.f32 %v344_v18, %v1840_v43  ;;  %v458_v22 = vadd.f32 %v457_v19, %v1842_v4  ;;  %655 = vmatprep.mubr.f32.mxu1 %v495_v9  ;;  %760 = vmatprep.mubr.f32.mxu0 %v497_v7 }
 0x23b   :  { %656 = vmatmul.mubr.f32.gmra.mrb[18].mxu1 %v494_v10  ;;  %761 = vmatmul.mubr.f32.gmra.mrb[26].mxu0 %v496_v1  ;;  %v498_v28 = vmax.f32 %v343_v16, 0.0  ;;  %v500_v29 = vmax.f32 %v456_v11, 0.0 }
 0x23c   :  { %v499_v49 = vmax.f32 %v345_v21, 0.0  ;;  %v501_v2 = vmax.f32 %v458_v22, 0.0  ;;  %1397 = vmatpush3.bf16.msra.mxu1 %v1620_v0  ;;  %v348_v25 = vpop.f32.mrb[6].mxu1  ;;  %v461_v26 = vpop.f32.mrb[14].mxu0 }
 0x23d   :  { %v349_v31 = vadd.f32 %v348_v25, %v1836_v41  ;;  %v462_v54 = vadd.f32 %v461_v26, %v1838_v42  ;;  %v350_v32 = vpop.f32.mrb[7].mxu1  ;;  %v463_v33 = vpop.f32.mrb[15].mxu0  ;;  %1390 = vmatprep.subr.bf16.mxu1 %v1631_v12 }
 0x23e   :  { %v351_v35 = vadd.f32 %v350_v32, %v1840_v43  ;;  %v464_v36 = vadd.f32 %v463_v33, %v1842_v4  ;;  %660 = vmatprep.mubr.f32.mxu1 %v499_v49  ;;  %765 = vmatprep.mubr.f32.mxu0 %v501_v2 }
 0x23f   :  { %661 = vmatmul.mubr.f32.gmra.mrb[20].mxu1 %v498_v28  ;;  %766 = vmatmul.mubr.f32.gmra.mrb[28].mxu0 %v500_v29  ;;  %v502_v38 = vmax.f32 %v349_v31, 0.0  ;;  %v504_v45 = vmax.f32 %v462_v54, 0.0  ;;  %v1410_v31 = vmov 0.0|0.0  }
 0x240   :  { %v503_v0 = vmax.f32 %v351_v35, 0.0  ;;  %v505_v37 = vmax.f32 %v464_v36, 0.0  ;;  %1398 = vmatpush3.bf16.msra.mxu1 %v1658_v20  ;;  %v354_v39 = vpop.f32.mrb[8].mxu1  ;;  %v467_v44 = vpop.f32.mrb[16].mxu0 }
 0x241   :  { %v355_v46 = vadd.f32 %v354_v39, %v1836_v41  ;;  %v468_v12 = vadd.f32 %v467_v44, %v1838_v42  ;;  %v356_v47 = vpop.f32.mrb[9].mxu1  ;;  %v469_v50 = vpop.f32.mrb[17].mxu0  ;;  %1391 = vmatprep.subr.bf16.mxu1 %v1667_v23 }
 0x242   :  { %v357_v51 = vadd.f32 %v356_v47, %v1840_v43  ;;  %v470_v6 = vadd.f32 %v469_v50, %v1842_v4  ;;  %665 = vmatprep.mubr.f32.mxu1 %v503_v0  ;;  %770 = vmatprep.mubr.f32.mxu0 %v505_v37 }
 0x243   :  { %666 = vmatmul.mubr.f32.gmra.mrb[22].mxu1 %v502_v38  ;;  %771 = vmatmul.mubr.f32.gmra.mrb[30].mxu0 %v504_v45  ;;  %v506_v57 = vmax.f32 %v355_v46, 0.0  ;;  %v508_v58 = vmax.f32 %v468_v12, 0.0 }
 0x244   :  { %v507_v20 = vmax.f32 %v357_v51, 0.0  ;;  %v509_v53 = vmax.f32 %v470_v6, 0.0  ;;  %1399 = vmatpush3.bf16.msra.mxu1 %v1692_v34  ;;  %v360_v55 = vpop.f32.mrb[10].mxu1  ;;  %v473_v56 = vpop.f32.mrb[18].mxu0 }
 0x245   :  { %v361_v59 = vadd.f32 %v360_v55, %v1836_v41  ;;  %v474_v23 = vadd.f32 %v473_v56, %v1838_v42  ;;  %v362_v60 = vpop.f32.mrb[11].mxu1  ;;  %v475_v61 = vpop.f32.mrb[19].mxu0  ;;  %1392 = vmatprep.subr.bf16.mxu1 %v1703_v40 }
 0x246   :  { %v363_v62 = vadd.f32 %v362_v60, %v1840_v43  ;;  %v476_v3 = vadd.f32 %v475_v61, %v1842_v4  ;;  %670 = vmatprep.mubr.f32.mxu1 %v507_v20  ;;  %775 = vmatprep.mubr.f32.mxu0 %v509_v53 }
 0x247   :  { %671 = vmatmul.mubr.f32.gmra.mrb[24].mxu1 %v506_v57  ;;  %776 = vmatmul.mubr.f32.gmra.mrb[32].mxu0 %v508_v58  ;;  %v510_v7 = vmax.f32 %v361_v59, 0.0  ;;  %v512_v14 = vmax.f32 %v474_v23, 0.0 }
 0x248   :  { %v511_v34 = vmax.f32 %v363_v62, 0.0  ;;  %v513_v5 = vmax.f32 %v476_v3, 0.0  ;;  %1400 = vmatpush3.bf16.msra.mxu1 %v1730_v48  ;;  %v366_v8 = vpop.f32.mrb[12].mxu1  ;;  %v479_v9 = vpop.f32.mrb[20].mxu0 }
 0x249   :  { %v367_v15 = vadd.f32 %v366_v8, %v1836_v41  ;;  %v368_v10 = vpop.f32.mrb[13].mxu1  ;;  %v481_v40 = vpop.f32.mrb[21].mxu0  ;;  %1393 = vmatprep.subr.bf16.mxu1 %v1739_v52 }
 0x24a   :  { %v369_v1 = vadd.f32 %v368_v10, %v1840_v43  ;;  %675 = vmatprep.mubr.f32.mxu1 %v511_v34  ;;  %780 = vmatprep.mubr.f32.mxu0 %v513_v5  ;;  %v482_v52 = vadd.f32 %v481_v40, %v1842_v4 }
 0x24b   :  { %676 = vmatmul.mubr.f32.gmra.mrb[26].mxu1 %v510_v7  ;;  %781 = vmatmul.mubr.f32.gmra.mrb[34].mxu0 %v512_v14  ;;  %v514_v18 = vmax.f32 %v367_v15, 0.0 }
 0x24c   :  { %v515_v16 = vmax.f32 %v369_v1, 0.0  ;;  %1401 = vmatpush3.bf16.msra.mxu1 %v1764_v63  ;;  %v372_v48 = vpop.f32.mrb[14].mxu1  ;;  %v485_v11 = vpop.f32.mrb[22].mxu0  ;;  %v480_v63 = vadd.f32 %v479_v9, %v1838_v42  ;;  %v517_v26 = vmax.f32 %v482_v52, 0.0 }
 0x24d   :  { %v373_v19 = vadd.f32 %v372_v48, %v1836_v41  ;;  %v374_v21 = vpop.f32.mrb[15].mxu1  ;;  %v487_v22 = vpop.f32.mrb[23].mxu0  ;;  %1394 = vmatprep.subr.bf16.mxu1 %v1775_v13 }
 0x24e   :  { %v375_v49 = vadd.f32 %v374_v21, %v1840_v43  ;;  %680 = vmatprep.mubr.f32.mxu1 %v515_v16  ;;  %v488_v41 = vadd.f32 %v487_v22, %v1842_v4  ;;  %v516_v13 = vmax.f32 %v480_v63, 0.0  ;;  %v486_v43 = vadd.f32 %v485_v11, %v1838_v42  ;;  %v877_v4 = vld [vmem:[%s1960_s5 + $0x8] sm:$0xff]  ;;  %v879_v42 = vld [vmem:[%s1960_s5 + $0x18] sm:$0xff] }
 0x24f   :  { %681 = vmatmul.mubr.f32.gmra.mrb[28].mxu1 %v514_v18  ;;  %v518_v25 = vmax.f32 %v373_v19, 0.0 }
 0x250   :  { %v519_v2 = vmax.f32 %v375_v49, 0.0  ;;  %1402 = vmatpush3.bf16.msra.mxu1 %v1799_v17  ;;  %v521_v28 = vmax.f32 %v488_v41, 0.0  ;;  %v520_v17 = vmax.f32 %v486_v43, 0.0 }
 0x251   :  { %1395 = vmatprep.subr.bf16.mxu1 %v1820_v27  ;;  %v876_v27 = vld [vmem:[%s1960_s5] sm:$0xff] }
 0x252   :  { %685 = vmatprep.mubr.f32.mxu1 %v519_v2  ;;  %v1377_v29 = vpack.c.bf16 %v877_v4, %v876_v27 }
 0x253   :  { %686 = vmatmul.mubr.f32.gmra.mrb[30].mxu1 %v518_v25 }
 0x254   :  { %1403 = vmatpush3.bf16.msra.mxu1 %v1828_v30  ;;  %785 = vmatprep.mubr.f32.mxu1 %v517_v26  ;;  %v878_v30 = vld [vmem:[%s1960_s5 + $0x10] sm:$0xff]  ;;  %v1915_v26 = vld [vmem:[%s1959_s4 + $0x4] ss:$0 sm:$0xff] }
 0x255   :  { %1376 = vmatprep.subr.bf16.mxu1 %v1410_v31  ;;  %v1380_v54 = vpack.c.bf16 %v879_v42, %v878_v30 }
 0x257   :  { %786 = vmatmul.mubr.f32.vlgmr.msra.gmra.mrb[32].mxu1 %v516_v13 }
 0x258   :  { %790 = vmatprep.mubr.f32.mxu1 %v521_v28  ;;  %1378 = vmatpush3.bf16.msra.mxu1 %v1377_v29 }
 0x259   :  { %1379 = vmatprep.subr.bf16.mxu1 %v1410_v31 }
 0x25b   :  { %791 = vmatmul.mubr.f32.gmra.mrb[34].mxu1 %v520_v17 }
 0x25c   :  { %1381 = vmatpush3.bf16.msra.mxu1 %v1380_v54  ;;  %1282 = vmatprep.mubr.msk.f32.mxu1 %vm1411_vm3, %v1408_v24 }
 0x25d   :  { %1382 = vmatprep.subr.bf16.mxu1 %v1410_v31 }
 0x30a   :  { %v1156_v32 = vpop.f32.mrb[16].mxu1  ;;  %v1212_v33 = vpop.f32.mrb[24].mxu0 }
 0x30b   :  { %v1157_v35 = vpop.f32.mrb[17].mxu1  ;;  %v1213_v36 = vpop.f32.mrb[25].mxu0 }
 0x30c   :  { %v1158_v0 = vadd.f32 %v1157_v35, %v1156_v32  ;;  %v1214_v37 = vadd.f32 %v1213_v36, %v1212_v33 }
 0x30e   :  { %v758_v39 = vadd.f32 %v1214_v37, %v1158_v0  ;;  %v1159_v44 = vpop.f32.mrb[18].mxu1  ;;  %v1215_v38 = vpop.f32.mrb[26].mxu0 }
 0x30f   :  { %v1160_v45 = vpop.f32.mrb[19].mxu1  ;;  %v1216_v46 = vpop.f32.mrb[27].mxu0 }
 0x310   :  { %v797_v12 = vsel %vm796_vm4, %v758_v39, 0.0  ;;  %v1161_v47 = vadd.f32 %v1160_v45, %v1159_v44  ;;  %v1217_v50 = vadd.f32 %v1216_v46, %v1215_v38 }
 0x311   :  { %v798_v51 = vrot.slane %v797_v12, 4 }
 0x312   :  { %v763_v6 = vadd.f32 %v1217_v50, %v1161_v47  ;;  %v1162_v20 = vpop.f32.mrb[20].mxu1  ;;  %v1218_v53 = vpop.f32.mrb[28].mxu0 }
 0x313   :  { %v799_v55 = vadd.f32 %v798_v51, %v797_v12  ;;  %v1163_v56 = vpop.f32.mrb[21].mxu1  ;;  %v1219_v57 = vpop.f32.mrb[29].mxu0 }
 0x314   :  { %v804_v58 = vsel %vm796_vm4, %v763_v6, 0.0  ;;  %v1164_v59 = vadd.f32 %v1163_v56, %v1162_v20  ;;  %v1220_v23 = vadd.f32 %v1219_v57, %v1218_v53 }
 0x315   :  { %v800_v60 = vrot.slane %v799_v55, 2  ;;  %v805_v61 = vrot.slane %v804_v58, 4 }
 0x316   :  { %v768_v62 = vadd.f32 %v1220_v23, %v1164_v59  ;;  %v1165_v3 = vpop.f32.mrb[22].mxu1  ;;  %v1221_v34 = vpop.f32.mrb[30].mxu0 }
 0x317   :  { %v801_v5 = vadd.f32 %v800_v60, %v799_v55  ;;  %v806_v8 = vadd.f32 %v805_v61, %v804_v58  ;;  %v1166_v9 = vpop.f32.mrb[23].mxu1  ;;  %v1222_v7 = vpop.f32.mrb[31].mxu0 }
 0x318   :  { %v811_v14 = vsel %vm796_vm4, %v768_v62, 0.0  ;;  %v1167_v15 = vadd.f32 %v1166_v9, %v1165_v3  ;;  %v1223_v10 = vadd.f32 %v1222_v7, %v1221_v34 }
 0x319   :  { %v802_v40 = vrot.slane %v801_v5, 1  ;;  %v807_v1 = vrot.slane %v806_v8, 2  ;;  %v812_v16 = vrot.slane %v811_v14, 4 }
 0x31a   :  { %v773_v48 = vadd.f32 %v1223_v10, %v1167_v15  ;;  %v1168_v11 = vpop.f32.mrb[24].mxu1  ;;  %v1224_v18 = vpop.f32.mrb[32].mxu0 }
 0x31b   :  { %v808_v19 = vadd.f32 %v807_v1, %v806_v8  ;;  %v813_v21 = vadd.f32 %v812_v16, %v811_v14  ;;  %v1169_v22 = vpop.f32.mrb[25].mxu1  ;;  %v1225_v52 = vpop.f32.mrb[33].mxu0  ;;  %v803_v49 = vadd.f32 %v802_v40, %v801_v5 }
 0x31c   :  { %v818_v2 = vsel %vm796_vm4, %v773_v48, 0.0  ;;  %v1170_v63 = vadd.f32 %v1169_v22, %v1168_v11  ;;  %v1226_v25 = vadd.f32 %v1225_v52, %v1224_v18 }
 0x31d   :  { %v809_v41 = vrot.slane %v808_v19, 1  ;;  %v814_v13 = vrot.slane %v813_v21, 2  ;;  %v819_v43 = vrot.slane %v818_v2, 4  ;;  %v860_v32 = vadd.f32 %v1915_v26, %v803_v49 }
 0x31e   :  { %v778_v28 = vadd.f32 %v1226_v25, %v1170_v63  ;;  %v1171_v17 = vpop.f32.mrb[26].mxu1  ;;  %v1227_v27 = vpop.f32.mrb[34].mxu0 }
 0x31f   :  { %v810_v4 = vadd.f32 %v809_v41, %v808_v19  ;;  %v815_v29 = vadd.f32 %v814_v13, %v813_v21  ;;  %v820_v30 = vadd.f32 %v819_v43, %v818_v2  ;;  %v1172_v42 = vpop.f32.mrb[27].mxu1  ;;  %v1228_v54 = vpop.f32.mrb[35].mxu0  ;;  %v868_v6 = vmax.f32 %v860_v32, 0.0 }
 0x320   :  { %v825_v33 = vsel %vm796_vm4, %v778_v28, 0.0  ;;  %v1173_v35 = vadd.f32 %v1172_v42, %v1171_v17  ;;  %v1229_v36 = vadd.f32 %v1228_v54, %v1227_v27 }
 0x321   :  { %v861_v0 = vadd.f32 %v1915_v26, %v810_v4  ;;  %v816_v37 = vrot.slane %v815_v29, 1  ;;  %v821_v39 = vrot.slane %v820_v30, 2  ;;  %v826_v44 = vrot.slane %v825_v33, 4 }
 0x322   :  { %v783_v38 = vadd.f32 %v1229_v36, %v1173_v35  ;;  %v1174_v45 = vpop.f32.mrb[28].mxu1 }
 0x323   :  { %v869_v46 = vmax.f32 %v861_v0, 0.0  ;;  %v817_v12 = vadd.f32 %v816_v37, %v815_v29  ;;  %v822_v47 = vadd.f32 %v821_v39, %v820_v30  ;;  %v827_v50 = vadd.f32 %v826_v44, %v825_v33  ;;  %v1175_v51 = vpop.f32.mrb[29].mxu1 }
 0x324   :  { %v832_v20 = vsel %vm796_vm4, %v783_v38, 0.0  ;;  %v1176_v53 = vadd.f32 %v1175_v51, %v1174_v45 }
 0x325   :  { %v895_v55 = vrot.slane %v869_v46, 7  ;;  %v862_v56 = vadd.f32 %v1915_v26, %v817_v12  ;;  %v823_v57 = vrot.slane %v822_v47, 1  ;;  %v828_v58 = vrot.slane %v827_v50, 2 }
 0x326   :  { %v833_v59 = vrot.slane %v832_v20, 4  ;;  %v1177_v23 = vpop.f32.mrb[30].mxu1 }
 0x327   :  { %v897_v60 = vsel %vm896_vm5, %v895_v55, %v868_v6  ;;  %v870_v61 = vmax.f32 %v862_v56, 0.0  ;;  %v824_v62 = vadd.f32 %v823_v57, %v822_v47  ;;  %v829_v3 = vadd.f32 %v828_v58, %v827_v50  ;;  %v1178_v34 = vpop.f32.mrb[31].mxu1 }
 0x328   :  { %v834_v5 = vadd.f32 %v833_v59, %v832_v20  ;;  %v1179_v8 = vadd.f32 %v1178_v34, %v1177_v23  ;;  %v989_v20 = vld [vmem:[%s1961_s6] sm:$0xff]  ;;  %v992_v23 = vld [vmem:[%s1961_s6 + $0x18] sm:$0xff] }
 0x329   :  { %v898_v9 = vrot.slane %v870_v61, 6  ;;  %v863_v7 = vadd.f32 %v1915_v26, %v824_v62  ;;  %v830_v14 = vrot.slane %v829_v3, 1  ;;  %v1104_v61 = vld [vmem:[%s1959_s4 + $0x5] ss:$0 sm:$0xff] }
 0x32a   :  { %v835_v15 = vrot.slane %v834_v5, 2  ;;  %v1230_v10 = vpop.f32.mrb[32].mxu1 }
 0x32b   :  { %v900_v40 = vsel %vm899_vm6, %v898_v9, %v897_v60  ;;  %v871_v1 = vmax.f32 %v863_v7, 0.0  ;;  %v831_v16 = vadd.f32 %v830_v14, %v829_v3  ;;  %v1231_v48 = vpop.f32.mrb[33].mxu1 }
 0x32c   :  { %v836_v11 = vadd.f32 %v835_v15, %v834_v5  ;;  %v1232_v18 = vadd.f32 %v1231_v48, %v1230_v10 }
 0x32d   :  { %v901_v19 = vrot.slane %v871_v1, 5  ;;  %v864_v21 = vadd.f32 %v1915_v26, %v831_v16 }
 0x32e   :  { %v837_v22 = vrot.slane %v836_v11, 1  ;;  %v788_v52 = vadd.f32 %v1232_v18, %v1176_v53  ;;  %v1233_v49 = vpop.f32.mrb[34].mxu1  ;;  %v990_v53 = vld [vmem:[%s1961_s6 + $0x8] sm:$0xff] }
 0x32f   :  { %v903_v2 = vsel %vm902_vm7, %v901_v19, %v900_v40  ;;  %v872_v63 = vmax.f32 %v864_v21, 0.0  ;;  %v1234_v25 = vpop.f32.mrb[35].mxu1  ;;  %v1383_v58 = vpack.c.bf16 %v990_v53, %v989_v20 }
 0x330   :  { %v838_v41 = vadd.f32 %v837_v22, %v836_v11  ;;  %v839_v13 = vsel %vm796_vm4, %v788_v52, 0.0  ;;  %v1235_v43 = vadd.f32 %v1234_v25, %v1233_v49 }
 0x331   :  { %v904_v28 = vrot.slane %v872_v63, 4  ;;  %v840_v17 = vrot.slane %v839_v13, 4 }
 0x332   :  { %v865_v27 = vadd.f32 %v1915_v26, %v838_v41  ;;  %v793_v4 = vadd.f32 %v1235_v43, %v1179_v8 }
 0x333   :  { %v841_v29 = vadd.f32 %v840_v17, %v839_v13  ;;  %v906_v30 = vsel %vm905_vm8, %v904_v28, %v903_v2 }
 0x334   :  { %v873_v42 = vmax.f32 %v865_v27, 0.0  ;;  %v846_v54 = vsel %vm796_vm4, %v793_v4, 0.0 }
 0x335   :  { %v842_v32 = vrot.slane %v841_v29, 2  ;;  %v847_v33 = vrot.slane %v846_v54, 4 }
 0x336   :  { %v907_v35 = vrot.slane %v873_v42, 3 }
 0x337   :  { %v843_v36 = vadd.f32 %v842_v32, %v841_v29  ;;  %v848_v0 = vadd.f32 %v847_v33, %v846_v54 }
 0x338   :  { %v909_v37 = vsel %vm908_vm9, %v907_v35, %v906_v30 }
 0x339   :  { %v844_v39 = vrot.slane %v843_v36, 1  ;;  %v849_v44 = vrot.slane %v848_v0, 2 }
 0x33b   :  { %v845_v38 = vadd.f32 %v844_v39, %v843_v36  ;;  %v850_v45 = vadd.f32 %v849_v44, %v848_v0 }
 0x33d   :  { %v866_v46 = vadd.f32 %v1915_v26, %v845_v38  ;;  %v851_v12 = vrot.slane %v850_v45, 1 }
 0x33f   :  { %v874_v47 = vmax.f32 %v866_v46, 0.0  ;;  %v852_v50 = vadd.f32 %v851_v12, %v850_v45 }
 0x341   :  { %v910_v51 = vrot.slane %v874_v47, 2  ;;  %v867_v6 = vadd.f32 %v1915_v26, %v852_v50  ;;  %v991_v26 = vld [vmem:[%s1961_s6 + $0x10] sm:$0xff] }
 0x342   :  { %v1386_v60 = vpack.c.bf16 %v992_v23, %v991_v26 }
 0x343   :  { %v875_v55 = vmax.f32 %v867_v6, 0.0  ;;  %v912_v56 = vsel %vm911_vm10, %v910_v51, %v909_v37 }
 0x345   :  { %v913_v57 = vrot.slane %v875_v55, 1 }
 0x347   :  { %v915_v59 = vsel %vm914_vm11, %v913_v57, %v912_v56 }
 0x348   :  { %1283 = vmatmul.mubr.msk.f32.vlgmr.msra.gmra.mrb[36].mxu1 %vm796_vm4, %v915_v59 }
 0x349   :  { %1384 = vmatpush3.bf16.msra.mxu1 %v1383_v58  ;;  %1293 = vmatprep.mubr.msk.f32.mxu1 %vm1411_vm3, %v1408_v24 }
 0x34a   :  { %1385 = vmatprep.subr.bf16.mxu1 %v1410_v31  ;;  %v1106_v31 = vld [vmem:[%s1959_s4 + $0x6] ss:$0 sm:$0xff] }
 0x34d   :  { %1387 = vmatpush3.bf16.msra.mxu1 %v1386_v60 }
 0x41b   :  { %v984_v62 = vpop.f32.mrb[36].mxu1 }
 0x41c   :  { %v985_v3 = vadd.f32 %v1104_v61, %v984_v62  ;;  %v1284_v34 = vpop.f32.mrb[37].mxu1 }
 0x41e   :  { %v988_v24 = vmax.f32 %v985_v3, 0.0 }
 0x420   :  { %1294 = vmatmul.mubr.msk.f32.vlgmr.msra.gmra.mrb[38].mxu1 %vm796_vm4, %v988_v24 }
 0x4f3   :  { %v1069_v5 = vpop.f32.mrb[38].mxu1 }
 0x4f4   :  { %v1070_v8 = vadd.f32 %v1106_v31, %v1069_v5  ;;  %v1295_v9 = vpop.f32.mrb[39].mxu1 }
 0x4f6   :  { %1074 = vst.msk [vmem:[%s1962_s7] sm:$0xff] %vm1073_vm12, %v1070_v8 }

</bundles_post_ra>
